<compile_context>
chip_gen: v7x
topology: tpu7x:2x2x1
jax: 0.10.0
libtpu: 0.0.40
codegen_flags: <defaults>
</compile_context>

<pallas_src>
import functools

import jax
import jax.numpy as jnp
from jax.experimental import pallas as pl
from jax.experimental.pallas import tpu as pltpu


def _round_up(a: int, b: int) -> int:
    return (a + b - 1) // b * b


def _vmem_limit_bytes() -> int:
    """~7/8 of per-core VMEM, capped at 110 MiB; falls back to 48 MiB."""
    try:
        info = pltpu.get_tpu_info()
        cap = getattr(info, "vmem_capacity_bytes", None)
        if cap:
            return int(min(cap * 7 // 8, 110 * 1024 * 1024))
    except Exception:
        pass
    return 48 * 1024 * 1024


def _conv_bn_kernel(x_ref, w_ref, b_ref, o_ref, xbuf_ref, rhs_ref, *,
                    offsets, cin, tm, relu):
    """One (Cout-tile x flat-spatial-tile) output block of one image.

    x_ref:    (Cin, Sp)      whole zero-padded, flattened image (bf16)
    w_ref:    (tn, K)        BN-scaled packed weights, K = KH*KW*Cin (bf16)
    b_ref:    (tn, 1)        folded BN bias (f32)
    o_ref:    (tn, tm)       output tile: Cout on sublanes, spatial on lanes
    xbuf_ref: (Cin, tm+pad)  VMEM copy of this tile's input window (bf16)
    rhs_ref:  (K, tm)        packed im2col RHS for this tile (bf16)
    """
    nbuf = xbuf_ref.shape[1]
    # One 128-aligned dynamic load per tile; the taps below use cheap static
    # slices of this VMEM buffer (tm is guaranteed to be a multiple of 128).
    q0 = pl.multiple_of(pl.program_id(2) * tm, 128)
    xbuf_ref[...] = x_ref[:, pl.ds(q0, nbuf)]

    # Pack the KH*KW shifted views into one contraction operand.
    for t, off in enumerate(offsets):                       # unrolled taps
        rhs_ref[t * cin:(t + 1) * cin, :] = xbuf_ref[:, off:off + tm]

    # Single MXU matmul with K = KH*KW*Cin; accumulation stays in the MXU.
    y = jnp.dot(w_ref[...], rhs_ref[...], preferred_element_type=jnp.float32)
    y = y + b_ref[...]                                      # fused BN bias
    if relu:
        y = jnp.maximum(y, 0.0)
    o_ref[...] = y.astype(o_ref.dtype)                      # written once


def basic_conv2d(x, weight, bn_params=None, *, stride=1, padding=0,
                 dilation=1, relu=False, tm_max=1024, tn_max=128,
                 out_dtype=None):
    """Conv2d(bias=False) + BatchNorm2d(eval) + optional ReLU via Pallas."""
    N, Cin, H, W = x.shape
    Cout, Cin_w, KH, KW = weight.shape
    assert Cin_w == Cin
    d = dilation
    out_dtype = x.dtype if out_dtype is None else out_dtype

    Hp, Wp = H + 2 * padding, W + 2 * padding
    Ho1, Wo1 = Hp - d * (KH - 1), Wp - d * (KW - 1)   # stride-1 output size
    assert Ho1 > 0 and Wo1 > 0
    T = KH * KW
    K = T * Cin

    # ---- fold BatchNorm (eval mode): scale -> weights, keep only bias ----
    if bn_params is not None:
        gamma, beta, running_mean, running_var, eps = bn_params
        scale = (gamma / jnp.sqrt(running_var + eps)).astype(jnp.float32)
        bias = (beta - running_mean * scale).astype(jnp.float32)
    else:
        scale = jnp.ones((Cout,), jnp.float32)
        bias = jnp.zeros((Cout,), jnp.float32)

    # ---- tiling (tm is always a multiple of 128: alignment hint needs it) ----
    M_flat = Ho1 * Wp                        # flat spatial positions computed
    tm_max = _round_up(tm_max, 128)
    tm = min(tm_max, _round_up(M_flat, 128))
    assert tm % 128 == 0
    M_pad = _round_up(M_flat, tm)
    tn_max = _round_up(tn_max, 8)
    tn = min(tn_max, _round_up(Cout, 8))
    Cout_p = _round_up(Cout, tn)

    off_max = (KH - 1) * d * Wp + (KW - 1) * d
    off_pad = _round_up(max(off_max, 1), 128)
    Sp = M_pad + off_pad                     # padded flat spatial length

    # ---- input: spatial zero-pad, flatten H*W, pad flat tail, cast bf16 ----
    # TODO(synk): fold these pre-passes into the kernel (masked boundary taps).
    xb = x.astype(jnp.bfloat16)
    xb = jnp.pad(xb, ((0, 0), (0, 0), (padding, padding), (padding, padding)))
    X = jnp.pad(xb.reshape(N, Cin, Hp * Wp),
                ((0, 0), (0, 0), (0, Sp - Hp * Wp)))

    # ---- weights: fold BN scale, repack to (Cout, K), cast bf16 ----
    # k = (kh*KW + kw)*Cin + c  -- matches the RHS packing in the kernel.
    wf = weight.astype(jnp.float32) * scale[:, None, None, None]
    W2 = jnp.transpose(wf, (0, 2, 3, 1)).reshape(Cout, K)
    if Cout_p != Cout:
        W2 = jnp.pad(W2, ((0, Cout_p - Cout), (0, 0)))
        bias = jnp.pad(bias, (0, Cout_p - Cout))
    W2 = W2.astype(jnp.bfloat16)
    Bv = bias.reshape(Cout_p, 1).astype(jnp.float32)

    offsets = tuple(kh * d * Wp + kw * d
                    for kh in range(KH) for kw in range(KW))
    grid = (N, Cout_p // tn, M_pad // tm)

    out = pl.pallas_call(
        functools.partial(_conv_bn_kernel, offsets=offsets, cin=Cin, tm=tm,
                          relu=relu),
        out_shape=jax.ShapeDtypeStruct((N, Cout_p, M_pad), out_dtype),
        grid_spec=pltpu.PrefetchScalarGridSpec(
            num_scalar_prefetch=0,
            grid=grid,
            in_specs=[
                # Whole padded image; same block across j/m => DMA'd once per n.
                # TODO(synk): spatial blocking / single-buffering of this block
                #             for very large images on v7x (64 MiB VMEM).
                pl.BlockSpec((None, Cin, Sp), lambda n, j, m: (n, 0, 0)),
                # Packed (tn, K) BN-scaled weights for this Cout tile.
                pl.BlockSpec((tn, K), lambda n, j, m: (j, 0)),
                # Folded BN bias for this Cout tile.
                pl.BlockSpec((tn, 1), lambda n, j, m: (j, 0)),
            ],
            out_specs=pl.BlockSpec((None, tn, tm), lambda n, j, m: (n, j, m)),
            scratch_shapes=[
                pltpu.VMEM((Cin, tm + off_pad), jnp.bfloat16),   # input window
                pltpu.VMEM((K, tm), jnp.bfloat16),               # packed RHS
            ],
        ),
        compiler_params=pltpu.CompilerParams(
            # Keep megacore sharding on batch / Cout tiles so the image block
            # is not duplicated across TensorCores (v7x).
            dimension_semantics=("parallel", "parallel", "arbitrary"),
            vmem_limit_bytes=_vmem_limit_bytes(),
        ),
    )(X, W2, Bv)

    # drop Cout/spatial padding and the wrapped garbage columns wo in [Wo1, Wp)
    out = out[:, :Cout, :M_flat].reshape(N, Cout, Ho1, Wp)[:, :, :, :Wo1]
    if stride != 1:
        # TODO(synk): dedicated strided fast path (currently stride-1 + subsample).
        out = out[:, :, ::stride, ::stride]
    return out


if __name__ == "__main__":
    key = jax.random.PRNGKey(0)
    k_x, k_w, k_g, k_b, k_m, k_v = jax.random.split(key, 6)

    # BasicConv2d(in_planes=4, out_planes=8, kernel_size=3, padding=1)
    N, Cin, H, W = 2, 4, 16, 16
    Cout, KH, KW = 8, 3, 3
    stride, padding, dilation = 1, 1, 1
    eps = 1e-5

    x = jax.random.normal(k_x, (N, Cin, H, W), jnp.float32)
    weight = jax.random.normal(k_w, (Cout, Cin, KH, KW), jnp.float32) * 0.1
    gamma = 1.0 + 0.1 * jax.random.normal(k_g, (Cout,), jnp.float32)
    beta = 0.1 * jax.random.normal(k_b, (Cout,), jnp.float32)
    running_mean = 0.1 * jax.random.normal(k_m, (Cout,), jnp.float32)
    running_var = jax.random.uniform(k_v, (Cout,), jnp.float32, 0.5, 1.5)

    def reference(x, weight, use_relu):
        y_conv = jax.lax.conv_general_dilated(
            x, weight, window_strides=(stride, stride),
            padding=[(padding, padding), (padding, padding)],
            rhs_dilation=(dilation, dilation),
            dimension_numbers=("NCHW", "OIHW", "NCHW"))
        s = (gamma / jnp.sqrt(running_var + eps)).reshape(1, Cout, 1, 1)
        b = (beta - running_mean * gamma / jnp.sqrt(running_var + eps)
             ).reshape(1, Cout, 1, 1)
        y = y_conv * s + b
        if use_relu:
            y = jnp.maximum(y, 0.0)
        return y

    for use_relu in (False, True):
        y = basic_conv2d(
            x, weight, (gamma, beta, running_mean, running_var, eps),
            stride=stride, padding=padding, dilation=dilation, relu=use_relu)
        y = jax.block_until_ready(y)
        y_ref = reference(x, weight, use_relu)
        assert y.shape == (N, Cout, H, W), y.shape
        # bf16 MXU operands -> slightly looser tolerance than pure-f32
        assert jnp.allclose(y, y_ref, atol=3e-2, rtol=3e-2), \
            float(jnp.max(jnp.abs(y - y_ref)))

    print("KERNEL_OK")
</pallas_src>

<mosaic_0001>
module attributes {stable_mosaic.version = 11 : i64} {
  func.func @_conv_bn_kernel(%arg0: i32, %arg1: i32, %arg2: i32, %arg3: memref<1x4x512xbf16, #tpu.memory_space<vmem>>, %arg4: memref<8x36xbf16, #tpu.memory_space<vmem>>, %arg5: memref<8x1xf32, #tpu.memory_space<vmem>>, %arg6: memref<1x8x384xf32, #tpu.memory_space<vmem>>, %arg7: memref<4x512xbf16, #tpu.memory_space<vmem>>, %arg8: memref<36x384xbf16, #tpu.memory_space<vmem>>) attributes {dimension_semantics = [#tpu.dimension_semantics<parallel>, #tpu.dimension_semantics<parallel>, #tpu.dimension_semantics<arbitrary>], iteration_bounds = array<i64: 2, 1, 1>, scalar_prefetch = 0 : i64, scratch_operands = 2 : i64, tpu.core_type = #tpu.core_type<tc>, window_params = [{transform_indices = @transform_0, window_bounds = array<i64: 1, 4, 512>}, {transform_indices = @transform_1, window_bounds = array<i64: 8, 36>}, {transform_indices = @transform_2, window_bounds = array<i64: 8, 1>}, {transform_indices = @transform_3, window_bounds = array<i64: 1, 8, 384>}]} {
    %c384_i32 = arith.constant 384 : i32
    %0 = arith.muli %arg2, %c384_i32 : i32
    %1 = tpu.assume_multiple %0, 128 : i32
    %c0 = arith.constant 0 : index
    %c0_0 = arith.constant 0 : index
    %2 = arith.index_cast %1 : i32 to index
    %3 = vector.load %arg3[%c0, %c0_0, %2] : memref<1x4x512xbf16, #tpu.memory_space<vmem>>, vector<1x4x512xbf16>
    %4 = vector.shape_cast %3 : vector<1x4x512xbf16> to vector<4x512xbf16>
    %c0_1 = arith.constant 0 : index
    %c0_2 = arith.constant 0 : index
    %5 = vector.load %arg7[%c0_1, %c0_2] : memref<4x512xbf16, #tpu.memory_space<vmem>>, vector<4x512xbf16>
    tpu.vector_store %arg7[%c0_1, %c0_2], %4 {strides = array<i32>} : memref<4x512xbf16, #tpu.memory_space<vmem>>, vector<4x512xbf16>,
    %c0_3 = arith.constant 0 : index
    %c0_4 = arith.constant 0 : index
    %6 = vector.load %arg7[%c0_3, %c0_4] : memref<4x512xbf16, #tpu.memory_space<vmem>>, vector<4x384xbf16>
    %c0_5 = arith.constant 0 : index
    %c0_6 = arith.constant 0 : index
    %7 = vector.load %arg8[%c0_5, %c0_6] : memref<36x384xbf16, #tpu.memory_space<vmem>>, vector<4x384xbf16>
    tpu.vector_store %arg8[%c0_5, %c0_6], %6 {strides = array<i32>} : memref<36x384xbf16, #tpu.memory_space<vmem>>, vector<4x384xbf16>,
    %c0_7 = arith.constant 0 : index
    %c1 = arith.constant 1 : index
    %8 = vector.load %arg7[%c0_7, %c1] : memref<4x512xbf16, #tpu.memory_space<vmem>>, vector<4x384xbf16>
    %c4 = arith.constant 4 : index
    %c0_8 = arith.constant 0 : index
    %9 = vector.load %arg8[%c4, %c0_8] : memref<36x384xbf16, #tpu.memory_space<vmem>>, vector<4x384xbf16>
    tpu.vector_store %arg8[%c4, %c0_8], %8 {strides = array<i32>} : memref<36x384xbf16, #tpu.memory_space<vmem>>, vector<4x384xbf16>,
    %c0_9 = arith.constant 0 : index
    %c2 = arith.constant 2 : index
    %10 = vector.load %arg7[%c0_9, %c2] : memref<4x512xbf16, #tpu.memory_space<vmem>>, vector<4x384xbf16>
    %c8 = arith.constant 8 : index
    %c0_10 = arith.constant 0 : index
    %11 = vector.load %arg8[%c8, %c0_10] : memref<36x384xbf16, #tpu.memory_space<vmem>>, vector<4x384xbf16>
    tpu.vector_store %arg8[%c8, %c0_10], %10 {strides = array<i32>} : memref<36x384xbf16, #tpu.memory_space<vmem>>, vector<4x384xbf16>,
    %c0_11 = arith.constant 0 : index
    %c18 = arith.constant 18 : index
    %12 = vector.load %arg7[%c0_11, %c18] : memref<4x512xbf16, #tpu.memory_space<vmem>>, vector<4x384xbf16>
    %c12 = arith.constant 12 : index
    %c0_12 = arith.constant 0 : index
    %13 = vector.load %arg8[%c12, %c0_12] : memref<36x384xbf16, #tpu.memory_space<vmem>>, vector<4x384xbf16>
    tpu.vector_store %arg8[%c12, %c0_12], %12 {strides = array<i32>} : memref<36x384xbf16, #tpu.memory_space<vmem>>, vector<4x384xbf16>,
    %c0_13 = arith.constant 0 : index
    %c19 = arith.constant 19 : index
    %14 = vector.load %arg7[%c0_13, %c19] : memref<4x512xbf16, #tpu.memory_space<vmem>>, vector<4x384xbf16>
    %c16 = arith.constant 16 : index
    %c0_14 = arith.constant 0 : index
    %15 = vector.load %arg8[%c16, %c0_14] : memref<36x384xbf16, #tpu.memory_space<vmem>>, vector<4x384xbf16>
    tpu.vector_store %arg8[%c16, %c0_14], %14 {strides = array<i32>} : memref<36x384xbf16, #tpu.memory_space<vmem>>, vector<4x384xbf16>,
    %c0_15 = arith.constant 0 : index
    %c20 = arith.constant 20 : index
    %16 = vector.load %arg7[%c0_15, %c20] : memref<4x512xbf16, #tpu.memory_space<vmem>>, vector<4x384xbf16>
    %c20_16 = arith.constant 20 : index
    %c0_17 = arith.constant 0 : index
    %17 = vector.load %arg8[%c20_16, %c0_17] : memref<36x384xbf16, #tpu.memory_space<vmem>>, vector<4x384xbf16>
    tpu.vector_store %arg8[%c20_16, %c0_17], %16 {strides = array<i32>} : memref<36x384xbf16, #tpu.memory_space<vmem>>, vector<4x384xbf16>,
    %c0_18 = arith.constant 0 : index
    %c36 = arith.constant 36 : index
    %18 = vector.load %arg7[%c0_18, %c36] : memref<4x512xbf16, #tpu.memory_space<vmem>>, vector<4x384xbf16>
    %c24 = arith.constant 24 : index
    %c0_19 = arith.constant 0 : index
    %19 = vector.load %arg8[%c24, %c0_19] : memref<36x384xbf16, #tpu.memory_space<vmem>>, vector<4x384xbf16>
    tpu.vector_store %arg8[%c24, %c0_19], %18 {strides = array<i32>} : memref<36x384xbf16, #tpu.memory_space<vmem>>, vector<4x384xbf16>,
    %c0_20 = arith.constant 0 : index
    %c37 = arith.constant 37 : index
    %20 = vector.load %arg7[%c0_20, %c37] : memref<4x512xbf16, #tpu.memory_space<vmem>>, vector<4x384xbf16>
    %c28 = arith.constant 28 : index
    %c0_21 = arith.constant 0 : index
    %21 = vector.load %arg8[%c28, %c0_21] : memref<36x384xbf16, #tpu.memory_space<vmem>>, vector<4x384xbf16>
    tpu.vector_store %arg8[%c28, %c0_21], %20 {strides = array<i32>} : memref<36x384xbf16, #tpu.memory_space<vmem>>, vector<4x384xbf16>,
    %c0_22 = arith.constant 0 : index
    %c38 = arith.constant 38 : index
    %22 = vector.load %arg7[%c0_22, %c38] : memref<4x512xbf16, #tpu.memory_space<vmem>>, vector<4x384xbf16>
    %c32 = arith.constant 32 : index
    %c0_23 = arith.constant 0 : index
    %23 = vector.load %arg8[%c32, %c0_23] : memref<36x384xbf16, #tpu.memory_space<vmem>>, vector<4x384xbf16>
    tpu.vector_store %arg8[%c32, %c0_23], %22 {strides = array<i32>} : memref<36x384xbf16, #tpu.memory_space<vmem>>, vector<4x384xbf16>,
    %c0_24 = arith.constant 0 : index
    %c0_25 = arith.constant 0 : index
    %24 = vector.load %arg4[%c0_24, %c0_25] : memref<8x36xbf16, #tpu.memory_space<vmem>>, vector<8x36xbf16>
    %c0_26 = arith.constant 0 : index
    %c0_27 = arith.constant 0 : index
    %25 = vector.load %arg8[%c0_26, %c0_27] : memref<36x384xbf16, #tpu.memory_space<vmem>>, vector<36x384xbf16>
    %cst = arith.constant dense<0.000000e+00> : vector<8x384xf32>
    %26 = tpu.matmul %24, %25, %cst {dimension_numbers = #tpu.dot_dimension_numbers<[1], [0], [0], [1], [0, 0, 1, 1], [], []>} : vector<8x36xbf16>, vector<36x384xbf16>, vector<8x384xf32> -> vector<8x384xf32>
    %c0_28 = arith.constant 0 : index
    %c0_29 = arith.constant 0 : index
    %27 = vector.load %arg5[%c0_28, %c0_29] : memref<8x1xf32, #tpu.memory_space<vmem>>, vector<8x1xf32>
    %28 = vector.broadcast %27 : vector<8x1xf32> to vector<8x384xf32>
    %29 = arith.addf %26, %28 : vector<8x384xf32>
    %c0_30 = arith.constant 0 : index
    %c0_31 = arith.constant 0 : index
    %c0_32 = arith.constant 0 : index
    %30 = vector.load %arg6[%c0_30, %c0_31, %c0_32] : memref<1x8x384xf32, #tpu.memory_space<vmem>>, vector<1x8x384xf32>
    %31 = vector.shape_cast %30 : vector<1x8x384xf32> to vector<8x384xf32>
    %32 = vector.shape_cast %29 : vector<8x384xf32> to vector<1x8x384xf32>
    tpu.vector_store %arg6[%c0_30, %c0_31, %c0_32], %32 {strides = array<i32>} : memref<1x8x384xf32, #tpu.memory_space<vmem>>, vector<1x8x384xf32>,
    return
  }
  func.func @transform_0(%arg0: i32, %arg1: i32, %arg2: i32) -> (i32, i32, i32) {
    %c0_i32 = arith.constant 0 : i32
    %c0_i32_0 = arith.constant 0 : i32
    %c0_i32_1 = arith.constant 0 : i32
    return %arg0, %c0_i32, %c0_i32_0 : i32, i32, i32
  }
  func.func @transform_1(%arg0: i32, %arg1: i32, %arg2: i32) -> (i32, i32) {
    %c0_i32 = arith.constant 0 : i32
    %c0_i32_0 = arith.constant 0 : i32
    return %arg1, %c0_i32 : i32, i32
  }
  func.func @transform_2(%arg0: i32, %arg1: i32, %arg2: i32) -> (i32, i32) {
    %c0_i32 = arith.constant 0 : i32
    %c0_i32_0 = arith.constant 0 : i32
    return %arg1, %c0_i32 : i32, i32
  }
  func.func @transform_3(%arg0: i32, %arg1: i32, %arg2: i32) -> (i32, i32, i32) {
    %c0_i32 = arith.constant 0 : i32
    return %arg0, %arg1, %arg2 : i32, i32, i32
  }
}

</mosaic_0001>

<bundles_post_ra>
// kernel: tpu_custom_call.1
= control target key start
LH: loop header
LB: loop body
LE: loop exit
PB: predicated region body
PF: predicated region fallthrough
CT: control target
= control target key end

     0   :  { %8 = vsyncpa [#allocation5], 0  ;;  %s1294_s0 = inlined_call_operand.hbm [shape: bf16[2,4,512], index: 0, kind: input, shape index: {}]   ;;  %s1295_s1 = inlined_call_operand.vmem [shape: bf16[8,36], index: 1, kind: input, shape index: {}]   ;;  %s1296_s2 = inlined_call_operand.vmem [shape: f32[8,1], index: 2, kind: input, shape index: {}]   ;;  %s1297_s3 = inlined_call_operand.hbm [shape: f32[2,8,384], index: 3, kind: output, shape index: {}]  }
   0x1   :  { %10 = vsyncpa [#allocation5 + $0x1], 0 }
   0x2   :  { %11 = vsyncpa [#allocation6], 0 }
   0x3   :  { %13 = vsyncpa [#allocation6 + $0x1], 0  ;;  %s1097_s12 = smov 0   ;;  %s1099_s13 = smov 0  }
   0x4   :  { %s1101_s14 = smov 0   ;;  %s1103_s15 = smov 0  }
   0x5   :  { %s1105_s16 = smov 0   ;;  %s1107_s17 = smov 0  }
   0x6 LB: > { %s815_s18 = sadd.s32 4294967295, %s1061_s17   ;;  %s816_s19 = sadd.s32 4294967294, %s1061_s17   ;;  %s1061_s17 = sphi %s1107_s17, %s19_s17   ;;  %s1057_s16 = sphi %s1105_s16, %s1313_s16   ;;  %s1053_s15 = sphi %s1103_s15, %s1312_s15   ;;  %s1049_s14 = sphi %s1101_s14, %s1311_s14   ;;  %s1045_s13 = sphi %s1099_s13, %s1310_s13   ;;  %s1041_s12 = sphi %s1097_s12, %s1309_s12  }
   0x7   : > { %s38_s20 = sadd.s32 1, %s1057_s16  ;;  %s45_s21 = sadd.s32 1, %s1049_s14 }
   0x8   : > { %p40_p0 = scmp.ge.s32.totalorder %s38_s20, 2  ;;  %p52_p1 = scmp.ne.s32.totalorder %s1049_s14, %s1045_s13 }
   0x9   : > { %p53_p2 = scmp.eq.s32.totalorder %s1061_s17, 0  ;;  %p58_p3 = scmp.ne.s32.totalorder %s1045_s13, %s1041_s12 }
   0xa   : > { %s1315_s20 = smov (%p40_p0, %s38_s20), 0  ;;  %p59_p5 = scmp.eq.s32.totalorder %s815_s18, 0 }
   0xb   : > { %p1138_p4 = por %p53_p2, %p52_p1  ;;  %s42_s23 = ssub.s32 %s1057_s16, %s1315_s20 }
   0xc   : > { %p138_p6 = scmp.eq.s32.totalorder %s815_s18, 1  ;;  %p43_p7 = scmp.eq.s32.totalorder %s42_s23, 0 }
   0xd   : > { %p1144_p8 = por %p59_p5, %p58_p3  ;;  %p144_p10 = scmp.eq.s32.totalorder %s816_s19, 1 }
   0xe   : > { %p1148_p9 = por %p138_p6, %p52_p1  ;;  %p872_p13 = scmp.lt.s32.totalorder %s1061_s17, 2 }
   0xf   : > { %s1153_s26 = scalar_select %p43_p7, %s1049_s14, %s45_s21  }
  0x10   : > { %s1301_s25 = scalar_select %p1148_p9, 1, 0 }
  0x11   : > { %p1155_p11 = por %p144_p10, %p58_p3  ;;  %s178_s28 = sand.u32 1, %s1049_s14  }
  0x12   : > { %s821_s29 = sshll.u32 %s178_s28, 3  ;;  %s843_s30 = sshll.u32 %s1057_s16, 7 }
  0x13   : > { %s1302_s27 = scalar_select %p1155_p11, 1, 0 }
  0x14   : > { %s1166_s6 = scalar_lea.hbm %s1294_s0, %s843_s30  ;;  %s182_s7 = scalar_lea.vmem [#allocation4], %s821_s29 }
  0x15   : > { %s190_s8 = sshll.u32 %s182_s7, 4  ;;  %p1172_p0 = pnand %p872_p13, %p1138_p4  ;;  %s1168_s8 = int_to_ptr.vmem [resolvable:$true] %s190_s8 }
  0x16   : > { %s179_s10 = scalar_lea.sflag [#allocation5], %s178_s28  ;;  %s949_s11 = scalar_lea.hbm %s1166_s6, 128 }
  0x17   : > { %p950_p3 = scmp.ne.s32.totalorder %s1166_s6, %s949_s11  ;;  %p951_p5 = pneg %p1172_p0 }
  0x18   : > { %s954_s21 = scalar_lea.hbm %s1294_s0, 256  ;;  %p955_p4 = scmp.lt.u32.totalorder %s1166_s6, %s1294_s0 }
  0x19   : > { %p952_p6 = pnand %p951_p5, %p950_p3  ;;  %p956_p10 = scmp.lt.u32.totalorder %s954_s21, %s949_s11 }
  0x1a   : > { %p958_p12 = scmp.lt.u32.totalorder %s949_s11, %s1166_s6 }
  0x1b   : > { %p953_p7 = pneg %p952_p6  ;;  %p957_p13 = por %p956_p10, %p955_p4 }
  0x1d   : > { %p959_p1 = por %p958_p12, %p957_p13 }
  0x1f   : > { %p960_p2 = pnand %p959_p1, %p953_p7 }
  0x21   : > { %963 = shalt.err (!%p960_p2)
}
  0x22   : > { %s964_s28 = scalar_lea.vmem %s1168_s8, 128  ;;  %s1063_s29 = smov [#allocation4]  }
  0x23   : > { %p965_p3 = scmp.ne.s32.totalorder %s1168_s8, %s964_s28  ;;  %s969_s30 = sshll.u32 %s1063_s29, 4  ;;  %s970_s30 = int_to_ptr.vmem [resolvable:$false] %s969_s30 }
  0x24   : > { %s971_s4 = scalar_lea.vmem %s970_s30, 256  ;;  %p972_p9 = scmp.lt.s32.totalorder %s1168_s8, %s970_s30 }
  0x25   : > { %p967_p6 = pnand %p965_p3, %p951_p5  ;;  %p973_p4 = scmp.lt.s32.totalorder %s971_s4, %s964_s28 }
  0x27   : > { %p968_p11 = pneg %p967_p6  ;;  %p974_p10 = por %p973_p4, %p972_p9 }
  0x29   : > { %p975_p12 = pnand %p974_p10, %p968_p11 }
  0x2b   : > { %978 = shalt.err (!%p975_p12)
}
  0x2c   : > { %867 = dma.hbm_to_vmem [thread:$0]  (!%p1172_p0), %s1166_s6, 128, %s1168_s8, %s179_s10  }
  0x2d   : > { %p1304_p1 = scmp.lt.s32.totalorder %s1061_s17, 3  ;;  %p1305_p2 = scmp.ge.s32.totalorder %s1061_s17, 1 }
  0x2f   : > { %p196_p5 = pnand %p1305_p2, %p1304_p1 }
  0x30   : > { %s1208_s5 = sand.u32 (!%p196_p5), 1, %s1045_s13  }
  0x31   : > { %199 = sbr.rel (%p196_p5) target bundleno = 456 (0x1c8), region = 32  ;;  %s825_s7 = sshll.u32 (!%p196_p5), %s1208_s5, 3 }
  0x32   : > { %s202_s11 = scalar_lea.sflag (!%p196_p5), [#allocation5], %s1208_s5  ;;  %s205_s18 = scalar_lea.vmem (!%p196_p5), [#allocation4], %s825_s7 }
  0x38   : > { %1032 = dma.done.wait (%p1144_p8), %s202_s11, 128  }
  0x39   : > { %1034 = vsyncadd (%p1144_p8), %s202_s11, 4294967168  ;;  %v280_v0 = vlaneseq  ;;  %v1064_v1 = vmov 1983009808   ;;  %v251_v6 = vld [vmem:[%s205_s18] sm:$0xff]  ;;  %s1065_s6 = smov 126   ;;  %s1066_s8 = smov 127  }
  0x3a   : > { %v278_v2 = vunpack.c.l.s4 %v1064_v1  ;;  %252 = vst [vmem:[#allocation2] sm:$0xff] %v251_v6  ;;  %v308_v8 = vcombine.high %v251_v6, %v251_v6  ;;  %v276_v9 = vcombine.low %v251_v6, %v251_v6  ;;  %s1067_s9 = smov 110   ;;  %s1068_s10 = smov 109   ;;  %v1071_v14 = vmov 0.0   ;;  %v534_v16 = vld [vmem:[%s1296_s2] sm:$0xff] }
  0x3b   : > { %v281_v3 = vshrl.u32 %v280_v0, 7  ;;  %s1069_s24 = smov 108   ;;  %s1070_s19 = smov 92   ;;  %848 = vmatprep.subr.bf16.mxu1 %v1071_v14  ;;  %vm1074_vm0 = vmmov 0   ;;  %v1075_v15 = vmov 0   ;;  %vm299_vm1 = vcmask 1039360  }
  0x3c   : > { %v279_v4 = vunpack.c.0.s8 %v278_v2  ;;  %s1072_s21 = smov 91   ;;  %s1073_s22 = smov 90   ;;  %854 = vmatprep.mubr.msk.bf16.mxu1 %vm1074_vm0, %v1071_v14  ;;  %626 = vmatprep.mubr.bf16.mxu0 %v1075_v15  ;;  %vm361_vm2 = vcmask 900096   ;;  %vm423_vm3 = vcmask 883712   ;;  %vm297_vm4 = vcmask 1043456  }
  0x3d   : > { %934 = vset.pattern.permute.xlu0 %v1075_v15  ;;  %vm330_vm5 = vcmask 1031168   ;;  %vm392_vm6 = vcmask 891904   ;;  %vm454_vm7 = vcmask 752640   ;;  %vm485_vm8 = vcmask 744448   ;;  %s858_s4 = smul.u32 24, %s1208_s5  ;;  %p1306_p9 = scmp.ne.s32.totalorder %s1301_s25, 0 }
  0x3e   : > { %v282_v5 = vsub.s32 %v279_v4, %v281_v3  ;;  %vm516_vm9 = vcmask 736256   ;;  %vm584_vm10 = vcmask 1041408   ;;  %vm580_vm11 = vcmask 293888   ;;  %s859_s7 = smul.u32 384, %s1053_s15  ;;  %s679_s15 = scalar_lea.sflag [#allocation6], %s1208_s5 }
  0x3f   : > { %s235_s11 = scalar_lea.vmem [#allocation7], %s858_s4 }
  0x40   : > { %v315_v7 = vrot.slane %v251_v6, %v282_v5  ;;  %v322_v12 = vrot.slane %v308_v8, %v282_v5  ;;  %v283_v13 = vrot.slane %v276_v9, %v282_v5  ;;  %s697_s18 = sshll.u32 %s235_s11, 4  ;;  %s1247_s18 = int_to_ptr.vmem [resolvable:$true] %s697_s18 }
  0x41   : > { %v253_v10 = vld [vmem:[#allocation2] sm:$0x3f] }
  0x42   : > { %323 = vrot.lane.b32.xlu1 %v315_v7, %s1065_s6  ;;  %293 = vrot.lane.b32.xlu0 %v315_v7, %s1066_s8  ;;  %v255_v11 = vcombine.high %v253_v10, %v253_v10  ;;  %826 = vst.sshfl [vmem:[#allocation3] sm:$0xf pattern:$0x76325410] %v253_v10 }
  0x44   : > { %827 = vst.sshfl [vmem:[#allocation3 + $0x8] sm:$0x3 pattern:$0x76325410] %v255_v11 }
  0x46   : > { %356 = vrot.lane.b32.xlu1 %v315_v7, %s1067_s9  ;;  %385 = vrot.lane.b32.xlu0 %v315_v7, %s1068_s10 }
  0x4a   : > { %418 = vrot.lane.b32.xlu1 %v315_v7, %s1069_s24  ;;  %447 = vrot.lane.b32.xlu0 %v315_v7, %s1070_s19 }
  0x4e   : > { %325 = vrot.lane.b32.xlu1 %v322_v12, %s1065_s6  ;;  %291 = vrot.lane.b32.xlu0 %v283_v13, %s1066_s8 }
  0x52   : > { %387 = vrot.lane.b32.xlu1 %v322_v12, %s1068_s10  ;;  %354 = vrot.lane.b32.xlu0 %v283_v13, %s1067_s9  ;;  %s1245_s9 = scalar_lea.hbm %s1297_s3, %s859_s7  ;;  %s979_s10 = scalar_lea.vmem %s1247_s18, 384 }
  0x53   : > { %p980_p8 = scmp.ne.s32.totalorder %s1247_s18, %s979_s10 }
  0x55   : > { %p981_p11 = pnand %p980_p8, %p1306_p9 }
  0x56   : > { %449 = vrot.lane.b32.xlu1 %v322_v12, %s1070_s19  ;;  %416 = vrot.lane.b32.xlu0 %v283_v13, %s1069_s24  ;;  %s1076_s24 = smov [#allocation7]  }
  0x57   : > { %p982_p0 = pneg %p981_p11  ;;  %s983_s19 = sshll.u32 %s1076_s24, 4  ;;  %s984_s19 = int_to_ptr.vmem [resolvable:$false] %s983_s19 }
  0x58   : > { %p986_p7 = scmp.lt.s32.totalorder %s1247_s18, %s984_s19 }
  0x5a   : > { %480 = vrot.lane.b32.xlu1 %v315_v7, %s1072_s21  ;;  %478 = vrot.lane.b32.xlu0 %v283_v13, %s1072_s21  ;;  %s985_s21 = scalar_lea.vmem %s984_s19, 768 }
  0x5b   : > { %p987_p13 = scmp.lt.s32.totalorder %s985_s21, %s979_s10 }
  0x5d   : > { %p988_p3 = por %p987_p13, %p986_p7 }
  0x5e   : > { %511 = vrot.lane.b32.xlu1 %v322_v12, %s1073_s22  ;;  %509 = vrot.lane.b32.xlu0 %v315_v7, %s1073_s22 }
  0x5f   : > { %p989_p6 = pnand %p988_p3, %p982_p0 }
  0x62   : > { %537 = vperm.xlu0 %934, %v534_v16  }
  0xb4   : > { %v324_v17 = vpop.permute.xlu1 %323  ;;  %v294_v18 = vpop.permute.xlu0 %293 }
  0xb5   : > { %v296_v19 = vrot.slane %v294_v18, 4  ;;  %v327_v31 = vrot.slane %v324_v17, 4 }
  0xb7   : > { %v301_v20 = vsel %vm299_vm1, %v294_v18, %v296_v19 }
  0xb8   : > { %305 = vst [vmem:[#allocation3 + $0x8] sm:$0xc] %v301_v20  ;;  %v357_v21 = vpop.permute.xlu1 %356  ;;  %v386_v22 = vpop.permute.xlu0 %385 }
  0xb9   : > { %v359_v23 = vrot.slane %v357_v21, 4  ;;  %v389_v41 = vrot.slane %v386_v22, 4 }
  0xbb   : > { %v363_v24 = vsel %vm361_vm2, %v357_v21, %v359_v23  ;;  %v523_v21 = vld [vmem:[%s1295_s1] sm:$0xf] }
  0xbc   : > { %367 = vst [vmem:[#allocation3 + $0x14] sm:$0xc] %v363_v24  ;;  %v419_v25 = vpop.permute.xlu1 %418  ;;  %v448_v26 = vpop.permute.xlu0 %447 }
  0xbd   : > { %v421_v27 = vrot.slane %v419_v25, 4  ;;  %v451_v51 = vrot.slane %v448_v26, 4 }
  0xbf   : > { %v425_v28 = vsel %vm423_vm3, %v419_v25, %v421_v27 }
  0xc0   : > { %429 = vst [vmem:[#allocation3 + $0x20] sm:$0xc] %v425_v28  ;;  %v326_v29 = vpop.permute.xlu1 %325  ;;  %v292_v30 = vpop.permute.xlu0 %291 }
  0xc1   : > { %v328_v32 = vrot.slane %v326_v29, 4  ;;  %v295_v33 = vrot.slane %v292_v30, 4 }
  0xc3   : > { %v329_v34 = vsel %vm297_vm4, %v327_v31, %v328_v32  ;;  %v332_v35 = vsel %vm330_vm5, %v326_v29, %v328_v32  ;;  %v298_v36 = vsel %vm297_vm4, %v295_v33, %v296_v19 }
  0xc4   : > { %v331_v37 = vsel %vm330_vm5, %v324_v17, %v329_v34  ;;  %336 = vst [vmem:[#allocation3 + $0x14] sm:$0x3] %v332_v35  ;;  %v300_v38 = vsel %vm299_vm1, %v292_v30, %v298_v36  ;;  %v388_v39 = vpop.permute.xlu1 %387  ;;  %v355_v40 = vpop.permute.xlu0 %354 }
  0xc5   : > { %335 = vst [vmem:[#allocation3 + $0xc] sm:$0x33] %v331_v37  ;;  %304 = vst [vmem:[#allocation3] sm:$0xcc] %v300_v38  ;;  %v390_v42 = vrot.slane %v388_v39, 4  ;;  %v358_v43 = vrot.slane %v355_v40, 4 }
  0xc7   : > { %v391_v44 = vsel %vm297_vm4, %v389_v41, %v390_v42  ;;  %v394_v45 = vsel %vm392_vm6, %v388_v39, %v390_v42  ;;  %v360_v46 = vsel %vm297_vm4, %v358_v43, %v359_v23 }
  0xc8   : > { %v393_v47 = vsel %vm392_vm6, %v386_v22, %v391_v44  ;;  %398 = vst [vmem:[#allocation3 + $0x20] sm:$0x3] %v394_v45  ;;  %v362_v48 = vsel %vm361_vm2, %v355_v40, %v360_v46  ;;  %v450_v49 = vpop.permute.xlu1 %449  ;;  %v417_v50 = vpop.permute.xlu0 %416 }
  0xc9   : > { %397 = vst [vmem:[#allocation3 + $0x18] sm:$0x33] %v393_v47  ;;  %366 = vst [vmem:[#allocation3 + $0xc] sm:$0xcc] %v362_v48  ;;  %v452_v52 = vrot.slane %v450_v49, 4  ;;  %v420_v53 = vrot.slane %v417_v50, 4 }
  0xcb   : > { %v453_v54 = vsel %vm297_vm4, %v451_v51, %v452_v52  ;;  %v456_v55 = vsel %vm454_vm7, %v450_v49, %v452_v52  ;;  %v422_v56 = vsel %vm297_vm4, %v420_v53, %v421_v27  ;;  %v938_v57 = vld [vmem:[#allocation3 + $0x8] ss:$12 sps:$4 sm:$0xff]  }
  0xcc   : > { %v455_v58 = vsel %vm454_vm7, %v448_v26, %v453_v54  ;;  %460 = vst [vmem:[#allocation3 + $0x2c] sm:$0x3] %v456_v55  ;;  %v424_v59 = vsel %vm423_vm3, %v417_v50, %v422_v56  ;;  %v481_v60 = vpop.permute.xlu1 %480  ;;  %v479_v61 = vpop.permute.xlu0 %478  ;;  %849 = vmatpush3.bf16.msra.mxu1 %v938_v57 }
  0xcd   : > { %459 = vst [vmem:[#allocation3 + $0x24] sm:$0x33] %v455_v58  ;;  %428 = vst [vmem:[#allocation3 + $0x18] sm:$0xcc] %v424_v59  ;;  %v483_v62 = vrot.slane %v481_v60, 4  ;;  %v482_v63 = vrot.slane %v479_v61, 4  ;;  %850 = vmatprep.subr.bf16.mxu1 %v1071_v14 }
  0xcf   : > { %v487_v0 = vsel %vm485_vm8, %v481_v60, %v483_v62  ;;  %v484_v1 = vsel %vm297_vm4, %v482_v63, %v483_v62 }
  0xd0   : > { %491 = vst [vmem:[#allocation3 + $0x2c] sm:$0xc] %v487_v0  ;;  %v486_v2 = vsel %vm485_vm8, %v479_v61, %v484_v1  ;;  %v512_v3 = vpop.permute.xlu1 %511  ;;  %v510_v4 = vpop.permute.xlu0 %509  ;;  %v939_v5 = vld [vmem:[#allocation3 + $0x4] ss:$12 sps:$4 sm:$0xff]   ;;  %v941_v6 = vld [vmem:[#allocation3] ss:$12 sps:$4 sm:$0xff]  }
  0xd1   : > { %490 = vst [vmem:[#allocation3 + $0x24] sm:$0xcc] %v486_v2  ;;  %v514_v7 = vrot.slane %v512_v3, 4  ;;  %v513_v8 = vrot.slane %v510_v4, 4  ;;  %594 = vmatprep.subr.bf16.mxu0 %v939_v5 }
  0xd2   : > { %595 = vmatpush1.bf16.msra.mxu0 %v941_v6 }
  0xd3   : > { %v518_v9 = vsel %vm516_vm9, %v512_v3, %v514_v7  ;;  %v515_v10 = vsel %vm297_vm4, %v513_v8, %v514_v7 }
  0xd4   : > { %522 = vst [vmem:[#allocation3 + $0x38] sm:$0x3] %v518_v9  ;;  %v517_v11 = vsel %vm516_vm9, %v510_v4, %v515_v10 }
  0xd5   : > { %521 = vst [vmem:[#allocation3 + $0x30] sm:$0x33] %v517_v11 }
  0xd7   : > { %v942_v12 = vld [vmem:[#allocation3 + $0x20] ss:$12 sps:$4 sm:$0xff]  }
  0xd8   : > { %v943_v13 = vld [vmem:[#allocation3 + $0x1c] ss:$12 sps:$4 sm:$0xff]   ;;  %v945_v15 = vld [vmem:[#allocation3 + $0x18] ss:$12 sps:$4 sm:$0xff]   ;;  %851 = vmatpush3.bf16.msra.mxu1 %v942_v12 }
  0xd9   : > { %596 = vmatprep.subr.bf16.mxu0 %v943_v13  ;;  %852 = vmatprep.subr.bf16.mxu1 %v1071_v14 }
  0xda   : > { %597 = vmatpush1.bf16.msra.mxu0 %v945_v15 }
  0xdb   : > { %v947_v16 = vld [vmem:[#allocation3 + $0x38] ss:$0 sps:$4 sm:$0x33]  }
  0xdc   : > { %v532_v17 = vld [vmem:[#allocation3 + $0x30] sm:$0x33]  ;;  %v592_v19 = vsel %vm584_vm10, %v947_v16, 0 }
  0xdd   : > { %v835_v18 = vcombine.high %v532_v17, %v532_v17  ;;  %v834_v20 = vcombine.low %v532_v17, %v532_v17  ;;  %853 = vmatpush3.bf16.msra.mxu1 %v592_v19 }
  0xdf   : > { %837 = vmatprep.subr.msk.bf16.mxu0 %vm584_vm10, %v835_v18  ;;  %v586_v22 = vsel %vm584_vm10, %v834_v20, 0 }
  0xe0   : > { %599 = vmatpush1.bf16.msra.mxu0 %v586_v22  ;;  %855 = vmatmul.mubr.msk.bf16.vlgmr.msra.gmra.mrb[0].mxu1 %vm580_vm11, %v523_v21 }
  0xe1   : > { %v538_v14 = vpop.permute.xlu0 %537 }
  0xe3   : > { %838 = vmatmul.mubr.msk.bf16.vlgmr.msra.gmra.mrb[0].mxu0 %vm580_vm11, %v523_v21 }
 0x1b3   : > { %v669_v23 = vpop.f32.mrb[0].mxu1 }
 0x1b4   : > { %v670_v24 = vadd.f32 %v669_v23, %v538_v14  ;;  %v856_v25 = vpop.f32.mrb[1].mxu1 }
 0x1b5   : > { %v672_v27 = vpop.f32.mrb[2].mxu1 }
 0x1b6   : > { %v628_v26 = vpop.f32.mrb[0].mxu0  ;;  %677 = vst [vmem:[%s235_s11 + $0x10] sm:$0xff] %v670_v24  ;;  %v857_v30 = vpop.f32.mrb[3].mxu1 }
 0x1b7   : > { %v629_v28 = vadd.f32 %v628_v26, %v538_v14  ;;  %v630_v29 = vpop.f32.mrb[1].mxu0 }
 0x1b8   : > { %v631_v31 = vadd.f32 %v630_v29, %v538_v14  ;;  %v632_v32 = vpop.f32.mrb[2].mxu0 }
 0x1b9   : > { %675 = vst [vmem:[%s235_s11] sm:$0xff] %v629_v28  ;;  %v633_v33 = vpop.f32.mrb[3].mxu0 }
 0x1ba   : > { %676 = vst [vmem:[%s235_s11 + $0x8] sm:$0xff] %v631_v31 }
 0x1bb   : > { %992 = shalt.err (!%p989_p6)
}
 0x1bc   : > { %s993_s5 = scalar_lea.hbm %s1245_s9, 384  ;;  %s997_s28 = scalar_lea.hbm %s1297_s3, 768 }
 0x1bd   : > { %p994_p4 = scmp.ne.s32.totalorder %s1245_s9, %s993_s5  ;;  %p998_p1 = scmp.lt.u32.totalorder %s1245_s9, %s1297_s3 }
 0x1be   : > { %p999_p2 = scmp.lt.u32.totalorder %s997_s28, %s993_s5  ;;  %p1001_p8 = scmp.lt.u32.totalorder %s993_s5, %s1245_s9 }
 0x1bf   : > { %p995_p10 = pnand %p994_p4, %p1306_p9 }
 0x1c0   : > { %p1000_p5 = por %p999_p2, %p998_p1 }
 0x1c1   : > { %p996_p12 = pneg %p995_p10 }
 0x1c2   : > { %p1002_p11 = por %p1001_p8, %p1000_p5 }
 0x1c4   : > { %p1003_p0 = pnand %p1002_p11, %p996_p12 }
 0x1c6   : > { %1006 = shalt.err (!%p1003_p0)
}
 0x1c7   : > { %862 = dma.vmem_to_hbm [thread:$0]  (%p1306_p9), %s1247_s18, 384, %s1245_s9, %s679_s15  }
 0x1c8 PF: > { %s709_s4 = sand.u32 1, %s1041_s12   ;;  %p1307_p7 = scmp.ne.s32.totalorder %s1302_s27, 0 }
 0x1c9   : > { %p1308_p13 = scmp.ge.s32.totalorder %s1061_s17, 2  ;;  %s710_s7 = scalar_lea.sflag [#allocation6], %s709_s4 }
 0x1cb   : > { %p869_p3 = pnand %p1308_p13, %p1307_p7 }
 0x1cd   : > { %1036 = dma.done.wait (!%p869_p3), %s710_s7, 384  }
 0x1ce   : > { %1038 = vsyncadd (!%p869_p3), %s710_s7, 4294966912  ;;  %s19_s17 = sadd.s32 1, %s1061_s17   ;;  %s1309_s12 = smov %s1045_s13 }
 0x1cf   : > { %p16_p6 = scmp.ge.s32.totalorder %s19_s17, 4   ;;  %s1310_s13 = smov %s1049_s14 }
 0x1d0   : > { %s1311_s14 = smov %s1153_s26  ;;  %s1312_s15 = smov %s1057_s16 }
 0x1d1   : > { %s1313_s16 = smov %s1315_s20  ;;  %18 = sbr.rel (!%p16_p6) target bundleno = 6 (0x6), region = 84 }
 0x1d8   :  { %715 = vsyncpa [#allocation5], 1 }
 0x1d9   :  { %717 = vsyncpa [#allocation5 + $0x1], 1 }
 0x1da   :  { %718 = vsyncpa [#allocation6], 1 }
 0x1db   :  { %720 = vsyncpa [#allocation6 + $0x1], 1 }

</bundles_post_ra>
